<compile_context>
chip_gen: v6e
topology: v6e:2x2x1
jax: 0.10.0
libtpu: 0.0.40
codegen_flags: <defaults>
</compile_context>

<pallas_src>
import functools

import numpy as np
import jax
import jax.numpy as jnp
from jax.experimental import pallas as pl
from jax.experimental.pallas import tpu as pltpu

HP = jax.lax.Precision.HIGHEST
LN_EPS = 1e-5  # torch.nn.LayerNorm default


def _row_tile(m, cap=128):
    """Largest multiple-of-16 divisor of m that is <= cap (falls back to m)."""
    best = m
    for t in range(16, min(m, cap) + 1, 16):
        if m % t == 0:
            best = t
    return best


# --------------------------- Pallas kernels ---------------------------------

def _proj_kernel(x_ref, w_ref, o_ref, *, scale):
    # x_ref: (D, F) f32, w_ref: (P, F) bf16  ->  o_ref: (P, D) f32
    # 1x1 conv == matmul contracting F:  out[p, d] = sum_f w[p, f] * x[d, f]
    x = x_ref[...].astype(jnp.bfloat16)
    acc = jax.lax.dot_general(
        w_ref[...], x,
        dimension_numbers=(((1,), (1,)), ((), ())),
        preferred_element_type=jnp.float32)
    if scale != 1.0:
        acc = acc * scale  # fold 1/temperature into the q projection epilogue
    o_ref[...] = acc


def _project(x, w_bf16, *, scale):
    """Per-item projection: out[g, p, d] = sum_f w[p, f] * x[g, d, f]."""
    G, D, F = x.shape
    P = w_bf16.shape[0]
    return pl.pallas_call(
        functools.partial(_proj_kernel, scale=scale),
        out_shape=jax.ShapeDtypeStruct((G, P, D), jnp.float32),
        grid=(G,),
        in_specs=[pl.BlockSpec((None, D, F), lambda g: (g, 0, 0)),
                  # constant block index -> the weight is DMA'd into VMEM once
                  pl.BlockSpec((P, F), lambda g: (0, 0))],
        out_specs=pl.BlockSpec((None, P, D), lambda g: (g, 0, 0)),
        compiler_params=pltpu.CompilerParams(
            dimension_semantics=("parallel",),
            vmem_limit_bytes=32 * 1024 * 1024),
    )(x, w_bf16)


def _attn_fused_kernel(q_ref, k_ref, v_ref, o_ref, *, way, dim):
    # q_ref: (TM, P)  bf16 rows of q_flat.T (already scaled by 1/temperature)
    # k_ref: (P, N)   bf16, N = dim * way  (the torch .view() flat layout)
    # v_ref: (TM, dim) f32 per-row value vectors v[b(m), w(m), :]
    # o_ref: (TM, way) f32 ; flat (row-major) order of the output == (b, w, i)
    s = jnp.dot(q_ref[...], k_ref[...],
                preferred_element_type=jnp.float32)        # (TM, N) logits, f32
    v = v_ref[...]
    for seg in range(way):                                  # static unroll
        a = s[:, seg * dim:(seg + 1) * dim]                 # (TM, dim)
        m = jnp.max(a, axis=-1, keepdims=True)
        e = jnp.exp(a - m)
        denom = jnp.sum(e, axis=-1, keepdims=True)
        p = e * (1.0 / denom)                               # one divide per row
        # attention-weighted value: VPU multiply + lane reduce (no tiny mat-vec)
        o_ref[:, seg:seg + 1] = jnp.sum(p * v, axis=-1, keepdims=True)


def _attn_fused(qT, k_flat, v_rows, *, way, dim):
    M, P = qT.shape
    N = k_flat.shape[1]
    TM = _row_tile(M)
    return pl.pallas_call(
        functools.partial(_attn_fused_kernel, way=way, dim=dim),
        out_shape=jax.ShapeDtypeStruct((M, way), jnp.float32),
        grid=(M // TM,),
        in_specs=[pl.BlockSpec((TM, P), lambda i: (i, 0)),
                  pl.BlockSpec((P, N), lambda i: (0, 0)),
                  pl.BlockSpec((TM, dim), lambda i: (i, 0))],
        out_specs=pl.BlockSpec((TM, way), lambda i: (i, 0)),
        compiler_params=pltpu.CompilerParams(
            dimension_semantics=("parallel",)),
    )(qT, k_flat, v_rows)


def _out_ln_kernel(ov_ref, wfcT_ref, res_ref, g_ref, b_ref, o_ref, *, eps):
    # fc (Conv1d 1x1, no bias) + residual + LayerNorm over D, all rows at once.
    z = jnp.dot(ov_ref[...], wfcT_ref[...],
                preferred_element_type=jnp.float32, precision=HP)
    # TODO(synk): nn.Dropout(0.1) is eval-mode identity here (no RNG applied).
    x = z + res_ref[...]
    mu = jnp.mean(x, axis=-1, keepdims=True)
    var = jnp.mean((x - mu) ** 2, axis=-1, keepdims=True)
    xn = (x - mu) * jax.lax.rsqrt(var + eps)
    o_ref[...] = xn * g_ref[...] + b_ref[...]


def _out_ln(ov, wfcT, res, gamma2d, beta2d):
    R, D = ov.shape
    return pl.pallas_call(
        functools.partial(_out_ln_kernel, eps=LN_EPS),
        out_shape=jax.ShapeDtypeStruct((R, D), jnp.float32),
    )(ov, wfcT, res, gamma2d, beta2d)


# --------------------------- forward (glue + kernels) ------------------------

def qgpa_forward(params, query, support, prototype):
    B, D, F = query.shape
    S = support.shape[0]
    way = S + 1
    P = params['wq'].shape[0]
    assert D % way == 0, "fused QGPA attention assumes `way` divides out_channel"
    inv_temp = 1.0 / (float(D) ** 0.5)   # temperature = out_channel ** 0.5

    wq_bf16 = params['wq'].astype(jnp.bfloat16)
    wk_bf16 = params['wk'].astype(jnp.bfloat16)

    # q_map / k_map: Conv1d(F, P, 1, bias=False); outputs in torch's [G, P, D]
    # conv layout; q is pre-scaled by 1/temperature inside the kernel.
    q_bpd = _project(query, wq_bf16, scale=inv_temp)       # [B, P, D] f32
    k_spd = _project(support, wk_bf16, scale=1.0)          # [S, P, D] f32

    # torch: support = cat([support.mean(0), support]).  k_map is linear, so the
    # mean is taken AFTER projection (mathematically identical, no F-wide concat).
    k_wpd = jnp.concatenate(
        [jnp.mean(k_spd, axis=0, keepdims=True), k_spd], axis=0)  # [way, P, D]

    # torch's q.view(P, D*B) / k.view(P, D*way) on the contiguous conv outputs
    # == free row-major reshape; only one small transpose (for q) remains.
    M = D * B
    N = D * way
    qT = jnp.reshape(q_bpd, (P, M)).T.astype(jnp.bfloat16)      # [M, P]
    k_flat = jnp.reshape(k_wpd, (P, N)).astype(jnp.bfloat16)    # [P, N]

    # v_map(prototype): tiny Linear, kept in XLA glue (~B*way*D*D MACs).
    v = jnp.einsum('bwd,od->bwo', prototype, params['wv'],
                   precision=HP) + params['bv']                  # [B, way, D]
    # Per-row value vectors of the flat attention layout: row m -> v[b(m), w(m)].
    v_rows = jnp.repeat(v, D // way, axis=1).reshape(M, D)       # [M, D]

    # scaled matmul + softmax(-1) + attention-weighted sum, fused; attn never
    # materialises in HBM.
    out_rows = _attn_fused(qT, k_flat, v_rows, way=way, dim=D)   # [M, way]
    # Row-major order of out_rows is exactly (b, w, i) order of the module output.
    ov = out_rows.reshape(B * way, D)

    # fc (1x1 conv, no bias) + dropout(identity) + residual + LayerNorm,
    # collapsed over B*way rows in a single ungridded call.
    out = _out_ln(ov, params['wfc'].T, jnp.reshape(prototype, (B * way, D)),
                  params['gamma'][None, :], params['beta'][None, :])
    return out.reshape(B, way, D)


# --------------------------- pure-JAX reference ------------------------------

def qgpa_ref(params, query, support, prototype):
    B, D, F = query.shape
    way = support.shape[0] + 1
    temp = float(D) ** 0.5
    q = jnp.einsum('pf,bdf->bpd', params['wq'], query, precision=HP)
    sup = jnp.concatenate([support.mean(0, keepdims=True), support], axis=0)
    k = jnp.einsum('pf,wdf->wpd', params['wk'], sup, precision=HP)
    v = jnp.einsum('bwd,od->bwo', prototype, params['wv'], precision=HP) + params['bv']
    P = q.shape[1]
    q_flat = q.reshape(P, D * B)
    k_flat = k.reshape(P, D * way)
    attn = jnp.matmul(q_flat.T / temp, k_flat, precision=HP).reshape(B, way, D, D)
    attn = jax.nn.softmax(attn, axis=-1)
    out = jnp.einsum('bwij,bwj->bwi', attn, v, precision=HP)
    z = jnp.einsum('oi,bwi->bwo', params['wfc'], out, precision=HP)
    x = z + prototype
    mu = x.mean(-1, keepdims=True)
    var = jnp.mean((x - mu) ** 2, axis=-1, keepdims=True)
    return (x - mu) / jnp.sqrt(var + LN_EPS) * params['gamma'] + params['beta']


# --------------------------- main --------------------------------------------

if __name__ == "__main__":
    # Small shapes consistent with the module structure:
    #   original: B=3, D=320 (in/out_channel), F=2048, P=512, S=3 (way=4)
    B, D, F, P, S = 2, 32, 64, 48, 3

    key = jax.random.PRNGKey(0)
    kq, ks, kp, k1, k2, k3, k4, k5 = jax.random.split(key, 8)

    query = jax.random.normal(kq, (B, D, F), jnp.float32)
    support = jax.random.normal(ks, (S, D, F), jnp.float32)
    prototype = jax.random.normal(kp, (B, S + 1, D), jnp.float32)

    params = dict(
        wq=0.05 * jax.random.normal(k1, (P, F), jnp.float32),    # q_map Conv1d weight
        wk=0.05 * jax.random.normal(k2, (P, F), jnp.float32),    # k_map Conv1d weight
        wv=0.05 * jax.random.normal(k3, (D, D), jnp.float32),    # v_map Linear weight
        bv=0.05 * jax.random.normal(k4, (D,), jnp.float32),      # v_map Linear bias
        wfc=0.05 * jax.random.normal(k5, (D, D), jnp.float32),   # fc Conv1d weight
        gamma=jnp.ones((D,), jnp.float32),                       # LayerNorm weight
        beta=jnp.zeros((D,), jnp.float32),                       # LayerNorm bias
    )

    out = qgpa_forward(params, query, support, prototype)
    out = jax.block_until_ready(out)

    ref = qgpa_ref(params, query, support, prototype)
    # Tolerance accounts for bf16 MXU operands in the projection / attention
    # matmuls (f32 accumulation) vs the f32-HIGHEST reference.
    np.testing.assert_allclose(np.asarray(out), np.asarray(ref),
                               rtol=1e-3, atol=1e-3)

    print("KERNEL_OK")
</pallas_src>

<mosaic_0001>
module attributes {stable_mosaic.version = 11 : i64} {
  func.func @_proj_kernel(%arg0: i32, %arg1: memref<1x32x64xf32, #tpu.memory_space<vmem>>, %arg2: memref<48x64xbf16, #tpu.memory_space<vmem>>, %arg3: memref<1x48x32xf32, #tpu.memory_space<vmem>>) attributes {dimension_semantics = [#tpu.dimension_semantics<parallel>], iteration_bounds = array<i64: 2>, scalar_prefetch = 0 : i64, scratch_operands = 0 : i64, tpu.core_type = #tpu.core_type<tc>, window_params = [{transform_indices = @transform_0, window_bounds = array<i64: 1, 32, 64>}, {pipeline_mode = #tpu.pipeline_mode<synchronous>, transform_indices = @transform_1, window_bounds = array<i64: 48, 64>}, {transform_indices = @transform_2, window_bounds = array<i64: 1, 48, 32>}]} {
    %c0 = arith.constant 0 : index
    %c0_0 = arith.constant 0 : index
    %c0_1 = arith.constant 0 : index
    %0 = vector.load %arg1[%c0, %c0_0, %c0_1] : memref<1x32x64xf32, #tpu.memory_space<vmem>>, vector<1x32x64xf32>
    %1 = vector.shape_cast %0 : vector<1x32x64xf32> to vector<32x64xf32>
    %2 = arith.truncf %1 : vector<32x64xf32> to vector<32x64xbf16>
    %c0_2 = arith.constant 0 : index
    %c0_3 = arith.constant 0 : index
    %3 = vector.load %arg2[%c0_2, %c0_3] : memref<48x64xbf16, #tpu.memory_space<vmem>>, vector<48x64xbf16>
    %cst = arith.constant dense<0.000000e+00> : vector<48x32xf32>
    %4 = tpu.matmul %3, %2, %cst {dimension_numbers = #tpu.dot_dimension_numbers<[1], [1], [0], [0], [0, 0, 1, 0], [], []>} : vector<48x64xbf16>, vector<32x64xbf16>, vector<48x32xf32> -> vector<48x32xf32>
    %cst_4 = arith.constant 0.176776692 : f32
    %5 = vector.broadcast %cst_4 : f32 to vector<48x32xf32>
    %6 = arith.mulf %4, %5 : vector<48x32xf32>
    %c0_5 = arith.constant 0 : index
    %c0_6 = arith.constant 0 : index
    %c0_7 = arith.constant 0 : index
    %7 = vector.load %arg3[%c0_5, %c0_6, %c0_7] : memref<1x48x32xf32, #tpu.memory_space<vmem>>, vector<1x48x32xf32>
    %8 = vector.shape_cast %7 : vector<1x48x32xf32> to vector<48x32xf32>
    %9 = vector.shape_cast %6 : vector<48x32xf32> to vector<1x48x32xf32>
    tpu.vector_store %arg3[%c0_5, %c0_6, %c0_7], %9 {strides = array<i32>} : memref<1x48x32xf32, #tpu.memory_space<vmem>>, vector<1x48x32xf32>,
    return
  }
  func.func @transform_0(%arg0: i32) -> (i32, i32, i32) {
    %c0_i32 = arith.constant 0 : i32
    %c0_i32_0 = arith.constant 0 : i32
    %c0_i32_1 = arith.constant 0 : i32
    return %arg0, %c0_i32, %c0_i32_0 : i32, i32, i32
  }
  func.func @transform_1(%arg0: i32) -> (i32, i32) {
    %c0_i32 = arith.constant 0 : i32
    %c0_i32_0 = arith.constant 0 : i32
    %c0_i32_1 = arith.constant 0 : i32
    return %c0_i32, %c0_i32_0 : i32, i32
  }
  func.func @transform_2(%arg0: i32) -> (i32, i32, i32) {
    %c0_i32 = arith.constant 0 : i32
    %c0_i32_0 = arith.constant 0 : i32
    %c0_i32_1 = arith.constant 0 : i32
    return %arg0, %c0_i32, %c0_i32_0 : i32, i32, i32
  }
}

</mosaic_0001>

<bundles_post_ra>
// kernel: tpu_custom_call.1
= control target key start
LH: loop header
LB: loop body
LE: loop exit
PB: predicated region body
PF: predicated region fallthrough
CT: control target
= control target key end

     0   :  { %7 = vsyncpa [#allocation3], 0  ;;  %s732_s0 = inlined_call_operand.hbm [shape: f32[2,32,64], index: 0, kind: input, shape index: {}]   ;;  %s733_s1 = inlined_call_operand.hbm [shape: bf16[48,64], index: 1, kind: input, shape index: {}]   ;;  %s734_s2 = inlined_call_operand.vmem [shape: f32[2,48,32], index: 2, kind: output, shape index: {}]  }
   0x1   :  { %9 = vsyncpa [#allocation3 + $0x1], 0 }
   0x2   :  { %10 = vsyncpa [#allocation5], 0  ;;  %s592_s9 = smov 0   ;;  %s594_s10 = smov 0  }
   0x3   :  { %s596_s11 = smov 0   ;;  %s598_s12 = smov 0  }
   0x4 LB: > { %s611_s13 = sadd.s32 4294967295, %s567_s12   ;;  %p36_p0 = scmp.ne.s32.totalorder %s559_s10, %s555_s9  ;;  %s567_s12 = sphi %s598_s12, %s749_s12   ;;  %s563_s11 = sphi %s596_s11, %s748_s11   ;;  %s559_s10 = sphi %s594_s10, %s747_s10   ;;  %s555_s9 = sphi %s592_s9, %s746_s9  }
   0x5   : > { %p735_p1 = scmp.eq.s32.totalorder %s611_s13, 0  ;;  %p371_p2 = scmp.ge.s32.totalorder %s567_s12, 1 }
   0x6   : > { %p94_p3 = scmp.lt.s32.totalorder %s567_s12, 3  ;;  %s569_s16 = smov [#allocation4]  }
   0x7   : > { %p619_p4 = por %p735_p1, %p36_p0  ;;  %s106_s17 = sshll.u32 %s569_s16, 4  ;;  %s107_s17 = int_to_ptr.vmem [resolvable:$true] %s106_s17 }
   0x8   : > { %p623_p5 = pnand %p371_p2, %p94_p3  ;;  %s636_s19 = sadd.s32 1, %s567_s12  }
   0x9   : > { %s738_s14 = scalar_select %p619_p4, 1, 0 }
   0xa   : > { %s739_s15 = scalar_select %p623_p5, 1, 0 }
   0xb   : > { %p422_p6 = pneg %p623_p5  ;;  %s23_s20 = sadd.s32 1, %s563_s11 }
   0xc   : > { %s20_s21 = ssub.s32 %s567_s12, %s636_s19  ;;  %s486_s22 = scalar_lea.vmem %s107_s17, 384 }
   0xd   : > { %p631_p7 = pnand %p422_p6, %p735_p1  ;;  %p487_p9 = scmp.ne.s32.totalorder %s107_s17, %s486_s22 }
   0xe   : > { %p494_p12 = scmp.lt.s32.totalorder %s107_s17, %s107_s17  ;;  %p495_p13 = scmp.lt.s32.totalorder %s486_s22, %s486_s22 }
   0xf   : > { %p477_p8 = pneg %p631_p7 }
  0x10   : > { %p496_p0 = por %p495_p13, %p494_p12 }
  0x11   : > { %p489_p10 = pnand %p487_p9, %p477_p8 }
  0x13   : > { %p490_p11 = pneg %p489_p10 }
  0x15   : > { %p497_p2 = pnand %p496_p0, %p490_p11 }
  0x17   : > { %500 = shalt.err (!%p497_p2)
}
  0x18   : > { %s570_s23 = smov 64   ;;  %s571_s24 = smov 4  }
  0x19   : > { %425 = dma.hbm_to_vmem [thread:$0]  (!%p631_p7), %s733_s1, 384, %s107_s17, [#allocation5], %s570_s23, %s570_s23, %s571_s24  }
  0x1a   : > { %p21_p3 = scmp.eq.s32.totalorder %s20_s21, 0  ;;  %p30_p6 = scmp.ne.s32.totalorder %s563_s11, %s559_s10 }
  0x1b   : > { %p31_p8 = scmp.eq.s32.totalorder %s567_s12, 0  ;;  %p431_p9 = scmp.lt.s32.totalorder %s567_s12, 2 }
  0x1c   : > { %s653_s27 = scalar_select %p21_p3, %s563_s11, %s23_s20  }
  0x1d   : > { %p32_p10 = por %p31_p8, %p30_p6  ;;  %s120_s28 = sand.u32 1, %s563_s11  }
  0x1e   : > { %s374_s29 = sshll.u32 %s120_s28, 5  ;;  %s389_s30 = sshll.u32 %s567_s12, 9 }
  0x1f   : > { %s660_s5 = scalar_lea.hbm %s732_s0, %s389_s30  ;;  %s124_s6 = scalar_lea.vmem [#allocation2], %s374_s29 }
  0x20   : > { %s131_s7 = sshll.u32 %s124_s6, 4  ;;  %p664_p7 = pnand %p431_p9, %p32_p10  ;;  %s662_s7 = int_to_ptr.vmem [resolvable:$true] %s131_s7 }
  0x21   : > { %s668_s9 = scalar_lea.sflag [#allocation3], %s120_s28  ;;  %s501_s12 = scalar_lea.hbm %s660_s5, 512 }
  0x22   : > { %p502_p11 = scmp.ne.s32.totalorder %s660_s5, %s501_s12  ;;  %p503_p12 = pneg %p664_p7 }
  0x23   : > { %s506_s18 = scalar_lea.hbm %s732_s0, 1024  ;;  %p507_p2 = scmp.lt.s32.totalorder %s660_s5, %s732_s0 }
  0x24   : > { %p504_p13 = pnand %p503_p12, %p502_p11  ;;  %p508_p3 = scmp.lt.s32.totalorder %s506_s18, %s501_s12 }
  0x26   : > { %p505_p0 = pneg %p504_p13  ;;  %p509_p6 = por %p508_p3, %p507_p2 }
  0x28   : > { %p510_p8 = pnand %p509_p6, %p505_p0 }
  0x2a   : > { %513 = shalt.err (!%p510_p8)
}
  0x2b   : > { %s514_s22 = scalar_lea.vmem %s662_s7, 512  ;;  %s572_s23 = smov [#allocation2]  }
  0x2c   : > { %p515_p9 = scmp.ne.s32.totalorder %s662_s7, %s514_s22  ;;  %s519_s24 = sshll.u32 %s572_s23, 4  ;;  %s520_s24 = int_to_ptr.vmem [resolvable:$false] %s519_s24 }
  0x2d   : > { %s521_s25 = scalar_lea.vmem %s520_s24, 1024  ;;  %p522_p13 = scmp.lt.s32.totalorder %s662_s7, %s520_s24 }
  0x2e   : > { %p517_p10 = pnand %p515_p9, %p503_p12  ;;  %p523_p1 = scmp.lt.s32.totalorder %s521_s25, %s514_s22 }
  0x30   : > { %p518_p11 = pneg %p517_p10  ;;  %p524_p4 = por %p523_p1, %p522_p13 }
  0x32   : > { %p525_p5 = pnand %p524_p4, %p518_p11 }
  0x34   : > { %528 = shalt.err (!%p525_p5)
}
  0x35   : > { %s573_s26 = smov 128   ;;  %s574_s28 = smov 8  }
  0x36   : > { %429 = dma.hbm_to_vmem [thread:$0]  (!%p664_p7), %s660_s5, 512, %s662_s7, %s668_s9, %s573_s26, %s573_s26, %s574_s28  }
  0x37   : > { %p742_p12 = scmp.ne.s32.totalorder %s739_s15, 0 }
  0x38   : > { %s145_s29 = sand.u32 (!%p742_p12), 1, %s559_s10   ;;  %p743_p1 = scmp.ne.s32.totalorder (!%p742_p12), %s738_s14, 0 }
  0x39   : > { %143 = sbr.rel (%p742_p12) target bundleno = 293 (0x125), region = 28  ;;  %s378_s30 = sshll.u32 (!%p742_p12), %s145_s29, 5 }
  0x3a   : > { %s146_s3 = scalar_lea.sflag (!%p742_p12), [#allocation3], %s145_s29  ;;  %s149_s4 = scalar_lea.vmem (!%p742_p12), [#allocation2], %s378_s30 }
  0x3e   : > { %546 = dma.done.wait (%p743_p1), %s146_s3, 512  }
  0x3f   : > { %548 = vsyncadd (%p743_p1), %s146_s3, 4294966784  ;;  %p744_p4 = scmp.eq.s32.totalorder %s611_s13, 0 }
  0x41   : > { %550 = dma.done.wait (%p744_p4), [#allocation5], 384   ;;  %p745_p5 = pmov %p744_p4 }
  0x42   : > { %v575_v0 = vmov 0.0   ;;  %vm576_vm0 = vmmov 0   ;;  %v182_v1 = vld [vmem:[%s149_s4 + $0x10] sm:$0xff]  ;;  %v183_v2 = vld [vmem:[%s149_s4 + $0x18] sm:$0xff]  ;;  %vm207_vm1 = vcmask 523264   ;;  %v180_v4 = vld [vmem:[%s149_s4] sm:$0xff] }
  0x43   : > { %552 = vsyncadd (%p745_p5), [#allocation5], 4294966912  ;;  %411 = vmatprep.subr.bf16.mxu1 %v575_v0  ;;  %395 = vmatprep.subr.bf16.mxu0 %v575_v0  ;;  %v185_v3 = vpack.c.bf16 %v183_v2, %v182_v1  ;;  %v181_v5 = vld [vmem:[%s149_s4 + $0x8] sm:$0xff]  ;;  %v473_v10 = vld [vmem:[#allocation4] sm:$0xff]   ;;  %p174_p7 = scmp.lt.s32.totalorder %s611_s13, 1  ;;  %vm286_vm2 = vcmask 261120  }
  0x44   : > { %403 = vmatprep.mubr.msk.bf16.mxu1 %vm576_vm0, %v575_v0  ;;  %399 = vmatprep.mubr.msk.bf16.mxu0 %vm576_vm0, %v575_v0  ;;  %v184_v7 = vpack.c.bf16 %v181_v5, %v180_v4  ;;  %v472_v9 = vld [vmem:[#allocation4 + $0x8] sm:$0xff]   ;;  %v474_v11 = vld [vmem:[#allocation4 + $0x10] sm:$0xff]  }
  0x45   : > { %v221_v6 = vsel %vm207_vm1, %v185_v3, 0  ;;  %s751_s13 = smov (!%p174_p7, %s611_s13), 1 }
  0x46   : > { %413 = vmatpush3.bf16.xpose.msra.mxu1 %v221_v6  ;;  %396 = vmatpush3.bf16.xpose.msra.mxu0 %v221_v6  ;;  %v218_v8 = vsel %vm207_vm1, %v184_v7, 0  ;;  %s415_s14 = smul.u32 48, %s751_s13 }
  0x47   : > { %412 = vmatprep.subr.bf16.mxu1 %v575_v0  ;;  %397 = vmatprep.subr.bf16.mxu0 %v575_v0 }
  0x48   : > { %s178_s6 = scalar_lea.vmem %s734_s2, %s415_s14 }
  0x4e   : > { %414 = vmatpush3.bf16.xpose.msra.mxu1 %v218_v8  ;;  %398 = vmatpush3.bf16.xpose.msra.mxu0 %v218_v8 }
  0x55   : > { %404 = vmatmul.mubr.msk.bf16.vlgmr.msra.gmra.mxu1 %vm207_vm1, %v472_v9  ;;  %400 = vmatmul.mubr.msk.bf16.vlgmr.msra.gmra.mxu0 %vm207_vm1, %v473_v10 }
  0x56   : > { %407 = vmatprep.mubr.msk.bf16.mxu1 %vm576_vm0, %v575_v0 }
  0x5d   : > { %408 = vmatmul.mubr.msk.bf16.gmra.mxu1 %vm207_vm1, %v474_v11 }
 0x115   : > { %v265_v12 = vpop.f32.mrf.mxu1  ;;  %v257_v13 = vpop.f32.mrf.mxu0 }
 0x116   : > { %v282_v14 = vmul.f32 0.17677669, %v265_v12  ;;  %v280_v15 = vmul.f32 0.17677669, %v257_v13 }
 0x117   : > { %v405_v16 = vpop.f32.mrf.mxu1  ;;  %v401_v17 = vpop.f32.mrf.mxu0 }
 0x118   : > { %289 = vst.msk [vmem:[%s178_s6 + $0x10] sm:$0xff] %vm286_vm2, %v282_v14  ;;  %287 = vst.msk [vmem:[%s178_s6] sm:$0xff] %vm286_vm2, %v280_v15 }
 0x119   : > { %v268_v18 = vpop.f32.mrf.mxu1  ;;  %v260_v19 = vpop.f32.mrf.mxu0 }
 0x11a   : > { %v283_v20 = vmul.f32 0.17677669, %v268_v18  ;;  %v281_v21 = vmul.f32 0.17677669, %v260_v19 }
 0x11b   : > { %v406_v22 = vpop.f32.mrf.mxu1  ;;  %v402_v23 = vpop.f32.mrf.mxu0 }
 0x11c   : > { %290 = vst.msk [vmem:[%s178_s6 + $0x18] sm:$0xff] %vm286_vm2, %v283_v20  ;;  %288 = vst.msk [vmem:[%s178_s6 + $0x8] sm:$0xff] %vm286_vm2, %v281_v21 }
 0x11d   : > { %v273_v24 = vpop.f32.mrf.mxu1 }
 0x11e   : > { %v284_v25 = vmul.f32 0.17677669, %v273_v24 }
 0x11f   : > { %v409_v26 = vpop.f32.mrf.mxu1 }
 0x120   : > { %291 = vst.msk [vmem:[%s178_s6 + $0x20] sm:$0xff] %vm286_vm2, %v284_v25 }
 0x121   : > { %v276_v27 = vpop.f32.mrf.mxu1 }
 0x122   : > { %v285_v28 = vmul.f32 0.17677669, %v276_v27 }
 0x123   : > { %v410_v29 = vpop.f32.mrf.mxu1 }
 0x124   : > { %292 = vst.msk [vmem:[%s178_s6 + $0x28] sm:$0xff] %vm286_vm2, %v285_v28 }
 0x125 PF: > { %p13_p0 = scmp.ge.s32.totalorder %s636_s19, 4   ;;  %s746_s9 = smov %s559_s10 }
 0x126   : > { %s747_s10 = smov %s563_s11  ;;  %s748_s11 = smov %s653_s27 }
 0x127   : > { %s749_s12 = smov %s636_s19  ;;  %15 = sbr.rel (!%p13_p0) target bundleno = 4 (0x4), region = 72 }
 0x12c   :  { %314 = vsyncpa [#allocation3], 1 }
 0x12d   :  { %316 = vsyncpa [#allocation3 + $0x1], 1 }
 0x12e   :  { %317 = vsyncpa [#allocation5], 1 }

</bundles_post_ra>
